<compile_context>
chip_gen: v7x
topology: tpu7x:2x2x1
jax: 0.10.0
libtpu: 0.0.40
codegen_flags: <defaults>
</compile_context>

<pallas_src>
import jax
import jax.numpy as jnp
from jax.experimental import pallas as pl
from jax.experimental.pallas import tpu as pltpu


# ----------------------------- prepare_input --------------------------------
_CAST_TILE_ROWS = 1024  # multiple of 8; only used when T*B is large enough for grid >= 2


def _cast_f32_kernel(x_ref, o_ref):
    # blstats -> float32 (torch `.float()`), whole tile at once.
    o_ref[...] = x_ref[...].astype(jnp.float32)


def _cast_f32(x2d):
    """x2d: (rows, feat) integer array -> (rows, feat) float32.

    Small inputs (the typical NetHack case: rows = T*B, feat ~ 25, a few KB)
    use a single full-array block — no padding, no slicing, one launch.
    Large inputs tile rows in 1024-row blocks (multiple of 8 sublanes, lane
    dim equals the full feature extent) so the grid is >= 2 and v7x can shard
    the "parallel" axis across both TensorCores.
    """
    rows, feat = x2d.shape
    if rows >= 2 * _CAST_TILE_ROWS:
        tile = _CAST_TILE_ROWS
        grid = (pl.cdiv(rows, tile),)  # ragged last block handled by masked stores
    else:
        tile = rows                    # block == full array: no (8,128) constraint
        grid = (1,)
    return pl.pallas_call(
        _cast_f32_kernel,
        out_shape=jax.ShapeDtypeStruct((rows, feat), jnp.float32),
        grid=grid,
        in_specs=[pl.BlockSpec((tile, feat), lambda i: (i, 0))],
        out_specs=pl.BlockSpec((tile, feat), lambda i: (i, 0)),
        compiler_params=pltpu.CompilerParams(
            dimension_semantics=("parallel",),  # dual-TC sharding on v7x when grid > 1
            vmem_limit_bytes=8 << 20,           # safe on v5e/v6e/v7x scoped defaults
        ),
    )(x2d)


def prepare_input(glyphs, blstats):
    """glyphs: (T, B, H, W) int; blstats: (T, B, F) int.
    Returns (glyphs_flat (T*B, H, W) unchanged dtype, features (T*B, F) float32)."""
    T, B = glyphs.shape[:2]
    # torch.flatten(glyphs, 0, 1): metadata-only view — no kernel, no HBM traffic.
    glyphs_flat = glyphs.reshape((T * B,) + glyphs.shape[2:])
    # blstats.view(T*B, -1).float(): view + single Pallas cast (no pad/slice passes).
    feats = _cast_f32(blstats.reshape(T * B, -1))
    return glyphs_flat, feats


# ------------------------- update_running_moments ---------------------------
def _running_moments_kernel(state_ref, n_ref, reward_ref, new_state_ref, std_ref):
    # state_ref (SMEM, (3,) f32): [reward_sum, reward_m2, reward_count]
    # n_ref     (SMEM, (1,) i32): number of valid rewards (rest is zero padding)
    # reward_ref (VMEM, (1, padded_n) f32): zero-padded reward batch
    curr_sum = state_ref[0]
    curr_m2 = state_ref[1]
    curr_count = state_ref[2]
    curr_mean = curr_sum / curr_count

    r = reward_ref[...]
    total = jnp.float32(r.shape[0] * r.shape[1])     # static padded size
    n = n_ref[0].astype(jnp.float32)                 # runtime valid count
    pad = total - n

    # Two independent reductions centered on curr_mean (co-schedulable on the XLU).
    c = r - curr_mean
    s1_all = jnp.sum(c)
    s2_all = jnp.sum(c * c)
    # Zero-padded elements contribute exactly -curr_mean to s1 and +curr_mean^2
    # to s2, so correct with two scalar terms instead of an iota/select mask.
    s1 = s1_all + pad * curr_mean                    # = new_sum - n * curr_mean
    s2 = s2_all - pad * curr_mean * curr_mean        # = sum((r - curr_mean)^2) over valid

    new_sum = s1 + n * curr_mean
    d = s1 / n                                       # new_mean - curr_mean
    # sum((r - new_mean)^2) == s2 - s1^2/n ; clamp to avoid tiny negative from f32 rounding.
    batch_m2 = jnp.maximum(s2 - s1 * s1 / n, 0.0)
    new_m2 = batch_m2 + curr_count * n / (curr_count + n) * d * d

    upd_sum = curr_sum + new_sum
    upd_m2 = curr_m2 + new_m2
    upd_count = curr_count + n

    new_state_ref[0] = upd_sum
    new_state_ref[1] = upd_m2
    new_state_ref[2] = upd_count
    std_ref[0] = jnp.sqrt(jnp.maximum(upd_m2, 0.0) / upd_count)


def update_running_moments(state, reward_batch):
    """Pure functional update (jit-friendly).

    state: (3,) f32 = [reward_sum, reward_m2, reward_count]; reward_batch: (N,) f32.
    Returns (new_state (3,) f32, running_std (1,) f32 of the updated state)."""
    reward = reward_batch.astype(jnp.float32).reshape(1, -1)
    n = reward.shape[1]
    # Bucket the length to the next power of two so variable batch lengths cause
    # at most O(log n) Mosaic recompiles; the true length rides in SMEM.
    padded = max(int(pl.next_power_of_2(n)), n)
    if padded != n:
        reward = jnp.pad(reward, ((0, 0), (0, padded - n)))
    n_arr = jnp.array([n], jnp.int32)
    # Whole batch resident in VMEM (RL reward batches are T*B floats, i.e. KBs).
    # Guard so a pathological caller cannot blow v7x's smaller VMEM budget.
    assert padded * 4 <= (8 << 20), "reward batch too large for single-block reduction"
    return pl.pallas_call(
        _running_moments_kernel,
        out_shape=(
            jax.ShapeDtypeStruct((3,), jnp.float32),
            jax.ShapeDtypeStruct((1,), jnp.float32),
        ),
        in_specs=[
            pl.BlockSpec(memory_space=pltpu.MemorySpace.SMEM),
            pl.BlockSpec(memory_space=pltpu.MemorySpace.SMEM),
            pl.BlockSpec(memory_space=pltpu.MemorySpace.VMEM),
        ],
        out_specs=(
            pl.BlockSpec(memory_space=pltpu.MemorySpace.SMEM),
            pl.BlockSpec(memory_space=pltpu.MemorySpace.SMEM),
        ),
    )(state, n_arr, reward)


# ------------------------------ module port ---------------------------------
class NetHackNetPallas:
    """JAX/Pallas port of minihack.agent.polybeast.models.base.NetHackNet."""

    def __init__(self):
        # register_buffer equivalents (same deterministic init as torch).
        self.reward_sum = jnp.zeros((), jnp.float32)
        self.reward_m2 = jnp.zeros((), jnp.float32)
        self.reward_count = jnp.full((), 1e-8, jnp.float32)

    def initial_state(self, batch_size=1):
        return ()

    # TODO(synk): forward() / embed_state() raise NotImplementedError in the
    # torch base class, so there is no concrete forward computation to port.

    def prepare_input(self, inputs):
        return prepare_input(inputs["glyphs"], inputs["blstats"])

    def update_running_moments(self, reward_batch):
        # NOTE: mutating self with traced arrays is fine in eager mode; under
        # jax.jit thread the (3,) state through `update_running_moments` instead.
        state = jnp.stack([self.reward_sum, self.reward_m2, self.reward_count])
        new_state, std = update_running_moments(state, reward_batch)
        self.reward_sum = new_state[0]
        self.reward_m2 = new_state[1]
        self.reward_count = new_state[2]
        return new_state, std[0]

    def get_running_std(self):
        return jnp.sqrt(self.reward_m2 / self.reward_count)


# --------------------------------- demo -------------------------------------
if __name__ == "__main__":
    key = jax.random.PRNGKey(0)
    kg, kb, kb2, kr1, kr2 = jax.random.split(key, 5)

    # Small NetHack-like shapes: glyphs (T, B, H, W), blstats (T, B, 25).
    T, B, H, W, F = 2, 2, 16, 32, 25
    glyphs = jax.random.randint(kg, (T, B, H, W), 0, 5976, dtype=jnp.int32)
    blstats = jax.random.randint(kb, (T, B, F), 0, 100, dtype=jnp.int32)
    reward1 = jax.random.normal(kr1, (8,), dtype=jnp.float32)
    reward2 = jax.random.normal(kr2, (13,), dtype=jnp.float32)  # non-power-of-2 -> pad path

    net = NetHackNetPallas()

    # --- prepare_input (small: single-block cast path) ---
    glyphs_flat, feats = net.prepare_input({"glyphs": glyphs, "blstats": blstats})

    # --- cast kernel, large input (tiled path, grid=(2,)) ---
    blstats_large = jax.random.randint(kb2, (2048, F), 0, 100, dtype=jnp.int32)
    feats_large = _cast_f32(blstats_large)

    # --- two running-moment updates (no-pad path, then pad+SMEM-n path) ---
    state1, std1 = net.update_running_moments(reward1)
    state2, std2 = net.update_running_moments(reward2)
    std_final = net.get_running_std()

    jax.block_until_ready((glyphs_flat, feats, feats_large, state1, state2, std1, std2, std_final))

    # ---- reference checks (plain JAX, mirrors the torch code) ----
    ref_glyphs = glyphs.reshape(T * B, H, W)
    ref_feats = blstats.reshape(T * B, F).astype(jnp.float32)
    assert glyphs_flat.shape == (T * B, H, W) and glyphs_flat.dtype == glyphs.dtype
    assert feats.shape == (T * B, F) and feats.dtype == jnp.float32
    assert jnp.array_equal(glyphs_flat, ref_glyphs)
    assert jnp.array_equal(feats, ref_feats)
    assert jnp.array_equal(feats_large, blstats_large.astype(jnp.float32))

    def ref_update(s, m2, cnt, r):
        n = float(r.shape[0])
        new_sum = jnp.sum(r)
        new_mean = new_sum / n
        curr_mean = s / cnt
        new_m2 = jnp.sum((r - new_mean) ** 2) + cnt * n / (cnt + n) * (new_mean - curr_mean) ** 2
        return s + new_sum, m2 + new_m2, cnt + n

    rs, rm2, rc = jnp.float32(0.0), jnp.float32(0.0), jnp.float32(1e-8)
    rs, rm2, rc = ref_update(rs, rm2, rc, reward1)
    ref_state1 = jnp.stack([rs, rm2, rc])
    rs, rm2, rc = ref_update(rs, rm2, rc, reward2)
    ref_state2 = jnp.stack([rs, rm2, rc])
    ref_std = jnp.sqrt(rm2 / rc)

    assert jnp.allclose(state1, ref_state1, rtol=1e-4, atol=1e-4)
    assert jnp.allclose(state2, ref_state2, rtol=1e-4, atol=1e-4)
    assert jnp.allclose(std2, ref_std, rtol=1e-4, atol=1e-4)
    assert jnp.allclose(std_final, ref_std, rtol=1e-4, atol=1e-4)

    print("KERNEL_OK")
</pallas_src>

<mosaic_0001>
module attributes {stable_mosaic.version = 11 : i64} {
  func.func @_cast_f32_kernel(%arg0: i32, %arg1: memref<4x25xi32, #tpu.memory_space<vmem>>, %arg2: memref<4x25xf32, #tpu.memory_space<vmem>>) attributes {dimension_semantics = [#tpu.dimension_semantics<parallel>], iteration_bounds = array<i64: 1>, scalar_prefetch = 0 : i64, scratch_operands = 0 : i64, tpu.core_type = #tpu.core_type<tc>, window_params = [{transform_indices = @transform_0, window_bounds = array<i64: 4, 25>}, {transform_indices = @transform_1, window_bounds = array<i64: 4, 25>}]} {
    %c0 = arith.constant 0 : index
    %c0_0 = arith.constant 0 : index
    %0 = vector.load %arg1[%c0, %c0_0] : memref<4x25xi32, #tpu.memory_space<vmem>>, vector<4x25xi32>
    %1 = arith.sitofp %0 : vector<4x25xi32> to vector<4x25xf32>
    %c0_1 = arith.constant 0 : index
    %c0_2 = arith.constant 0 : index
    %2 = vector.load %arg2[%c0_1, %c0_2] : memref<4x25xf32, #tpu.memory_space<vmem>>, vector<4x25xf32>
    tpu.vector_store %arg2[%c0_1, %c0_2], %1 {strides = array<i32>} : memref<4x25xf32, #tpu.memory_space<vmem>>, vector<4x25xf32>,
    return
  }
  func.func @transform_0(%arg0: i32) -> (i32, i32) {
    %c0_i32 = arith.constant 0 : i32
    %c0_i32_0 = arith.constant 0 : i32
    return %arg0, %c0_i32 : i32, i32
  }
  func.func @transform_1(%arg0: i32) -> (i32, i32) {
    %c0_i32 = arith.constant 0 : i32
    %c0_i32_0 = arith.constant 0 : i32
    return %arg0, %c0_i32 : i32, i32
  }
}

</mosaic_0001>

<bundles_post_ra>
// kernel: tpu_custom_call.1
= control target key start
LH: loop header
LB: loop body
LE: loop exit
PB: predicated region body
PF: predicated region fallthrough
CT: control target
= control target key end

     0   :  { %6 = vsyncpa [#allocation3], 0  ;;  %s126_s0 = inlined_call_operand.hbm [shape: s32[4,25], index: 0, kind: input, shape index: {}]   ;;  %s127_s1 = inlined_call_operand.hbm [shape: f32[4,25], index: 1, kind: output, shape index: {}]  }
   0x1   :  { %7 = vsyncpa [#allocation4], 0  ;;  %s90_s6 = smov [#allocation2]   ;;  %s42_s10 = scalar_lea.hbm %s126_s0, 64 }
   0x2   :  { %s14_s7 = sshll.u32 %s90_s6, 4  ;;  %p43_p0 = scmp.ne.s32.totalorder %s126_s0, %s42_s10  ;;  %s15_s7 = int_to_ptr.vmem [resolvable:$true] %s14_s7 }
   0x3   :  { %p46_p1 = scmp.lt.u32.totalorder %s42_s10, %s126_s0 }
   0x5   :  { %p48_p2 = pnand %p46_p1, %p43_p0 }
   0x7   :  { %51 = shalt.err (!%p48_p2)
}
   0x8   :  { %s52_s15 = scalar_lea.vmem %s15_s7, 64  ;;  %p57_p4 = scmp.lt.s32.totalorder %s15_s7, %s15_s7 }
   0x9   :  { %p53_p3 = scmp.ne.s32.totalorder %s15_s7, %s52_s15  ;;  %p58_p5 = scmp.lt.s32.totalorder %s52_s15, %s52_s15 }
   0xb   :  { %p59_p6 = por %p58_p5, %p57_p4 }
   0xd   :  { %p60_p7 = pnand %p59_p6, %p53_p3 }
   0xf   :  { %63 = shalt.err (!%p60_p7)
}
  0x10   :  { %17 = dma.hbm_to_vmem [thread:$0]  %s126_s0, 64, %s15_s7, [#allocation3]  }
  0x11   :  { %86 = dma.done.wait [#allocation3], 64  }
  0x12   :  { %87 = vsyncadd [#allocation3], 4294967232  ;;  %s91_s18 = smov [#allocation5]   ;;  %v21_v0 = vld [vmem:[#allocation2] sm:$0xf]  ;;  %vm23_vm0 = vcmask 199680  }
  0x13   :  { %s31_s19 = sshll.u32 %s91_s18, 4  ;;  %v22_v1 = vcvt.s32.f32 %v21_v0  ;;  %s32_s19 = int_to_ptr.vmem [resolvable:$true] %s31_s19 }
  0x14   :  { %s64_s20 = scalar_lea.vmem %s32_s19, 64  ;;  %p69_p9 = scmp.lt.s32.totalorder %s32_s19, %s32_s19 }
  0x15   :  { %24 = vst.msk [vmem:[#allocation5] sm:$0xf] %vm23_vm0, %v22_v1  ;;  %p65_p8 = scmp.ne.s32.totalorder %s32_s19, %s64_s20  ;;  %p70_p10 = scmp.lt.s32.totalorder %s64_s20, %s64_s20 }
  0x17   :  { %p71_p11 = por %p70_p10, %p69_p9 }
  0x19   :  { %p72_p12 = pnand %p71_p11, %p65_p8 }
  0x1b   :  { %75 = shalt.err (!%p72_p12)
}
  0x1c   :  { %s76_s0 = scalar_lea.hbm %s127_s1, 64 }
  0x1d   :  { %p77_p13 = scmp.ne.s32.totalorder %s127_s1, %s76_s0  ;;  %p80_p0 = scmp.lt.u32.totalorder %s76_s0, %s127_s1 }
  0x1f   :  { %p82_p1 = pnand %p80_p0, %p77_p13 }
  0x21   :  { %85 = shalt.err (!%p82_p1)
}
  0x22   :  { %34 = dma.vmem_to_hbm [thread:$0]  %s32_s19, 64, %s127_s1, [#allocation4]  }
  0x23   :  { %88 = dma.done.wait [#allocation4], 64  }
  0x24   :  { %89 = vsyncadd [#allocation4], 4294967232 }
  0x25   :  { %38 = vsyncpa [#allocation3], 1 }
  0x26   :  { %39 = vsyncpa [#allocation4], 1 }

</bundles_post_ra>
